<compile_context>
chip_gen: v7x
topology: tpu7x:2x2x1
jax: 0.10.0
libtpu: 0.0.40
codegen_flags: <defaults>
</compile_context>

<pallas_src>
import jax
import jax.numpy as jnp
from jax import lax
from jax.experimental import pallas as pl
from jax.experimental.pallas import tpu as pltpu

_EPS = 1e-8  # PyTorch cosine_similarity default eps


def _round_up(x: int, m: int) -> int:
    return ((x + m - 1) // m) * m


def _tpu_generation():
    """Best-effort TPU generation detection (None if unknown)."""
    try:
        kind = jax.devices()[0].device_kind.lower()
    except Exception:  # pragma: no cover - defensive
        return None
    if "v7" in kind or "7x" in kind:
        return 7
    if "v6" in kind:
        return 6
    if "v5" in kind:
        return 5
    return None


# Per-generation knobs: batch-split count (megacore), total VMEM budget used for
# sizing the batch tile, and the vmem_limit_bytes cap passed to the compiler.
_GEN_CFG = {
    7: dict(num_splits=2, vmem_budget=40 << 20, vmem_cap=52 << 20),   # 64 MiB physical
    6: dict(num_splits=1, vmem_budget=88 << 20, vmem_cap=100 << 20),  # 128 MiB physical
    5: dict(num_splits=1, vmem_budget=52 << 20, vmem_cap=64 << 20),   # 128 MiB physical
}
_DEFAULT_CFG = dict(num_splits=1, vmem_budget=36 << 20, vmem_cap=48 << 20)


def _make_triplet_loss_kernel(margin: float, batch: int, tiles: int, tb: int):
    eps2 = _EPS * _EPS

    def kernel(ref_ref, pos_ref, neg_ref, out_ref, acc_ref):
        c = pl.program_id(0)  # batch split (parallel across TensorCores on v7x)
        t = pl.program_id(1)  # batch tile within the split (reduction axis)

        @pl.when(t == 0)
        def _init():
            acc_ref[...] = jnp.zeros_like(acc_ref)

        # (TB, D) blocks in native layout; upcast to f32 for the math.
        r = ref_ref[...].astype(jnp.float32)
        p = pos_ref[...].astype(jnp.float32)
        n = neg_ref[...].astype(jnp.float32)

        # Per-sample reductions over the feature (lane) axis -> (TB, 1).
        dot_rp = jnp.sum(r * p, axis=1, keepdims=True)
        dot_rn = jnp.sum(r * n, axis=1, keepdims=True)
        ss_r = jnp.sum(r * r, axis=1, keepdims=True)
        ss_p = jnp.sum(p * p, axis=1, keepdims=True)
        ss_n = jnp.sum(n * n, axis=1, keepdims=True)

        # PyTorch eps semantics: each norm clamped separately,
        #   cos = dot / (max(|a|, eps) * max(|b|, eps))
        #       = dot * rsqrt(max(|a|^2, eps^2)) * rsqrt(max(|b|^2, eps^2))
        inv_r = lax.rsqrt(jnp.maximum(ss_r, eps2))
        inv_p = lax.rsqrt(jnp.maximum(ss_p, eps2))
        inv_n = lax.rsqrt(jnp.maximum(ss_n, eps2))

        x1 = dot_rp * inv_r * inv_p  # cos(ref, pos)
        x2 = dot_rn * inv_r * inv_n  # cos(ref, neg)
        hinge = jnp.maximum(0.0, margin - (x1 - x2))  # (TB, 1)

        # Nominal (unclamped) first row of this block; used both for the fast/tail
        # split and for masking any duplicated (clamped) trailing block.
        row0 = (c * tiles + t) * tb

        @pl.when(row0 + tb <= batch)
        def _full_block():
            acc_ref[...] += hinge

        @pl.when(row0 + tb > batch)
        def _tail_block():
            rows = row0 + lax.broadcasted_iota(jnp.int32, (tb, 1), 0)
            acc_ref[...] += jnp.where(rows < batch, hinge, 0.0)

        @pl.when(t == tiles - 1)
        def _finalize():
            # Partial (unnormalized) hinge sum for this batch split.
            out_ref[...] = jnp.sum(acc_ref[...], axis=0, keepdims=True).reshape(1, 1, 1)

    return kernel


def triplet_ranking_loss(ref, pos, neg, margin: float = 0.2, *,
                         num_splits=None, batch_tile=None):
    """ref, pos, neg: (B, D) arrays (f32 / bf16 / fp16). Returns scalar f32 loss."""
    assert ref.shape == pos.shape == neg.shape and ref.ndim == 2
    B, D = ref.shape
    itemsize = jnp.dtype(ref.dtype).itemsize

    cfg = _GEN_CFG.get(_tpu_generation(), _DEFAULT_CFG)
    if num_splits is None:
        num_splits = cfg["num_splits"]
    num_splits = max(1, int(num_splits))

    # Sublane multiple for the second-to-last block dim (8 f32, 16 bf16, 32 int8).
    sub = 8 * max(1, 4 // itemsize)
    d_pad = _round_up(D, 128)  # lane-padded VMEM footprint of one row
    # Per-row VMEM bytes: 3 inputs x 2 pipeline buffers (HBM dtype) plus a
    # conservative allowance for in-kernel f32 upcasts / product temporaries.
    per_row = 6 * d_pad * itemsize + 4 * d_pad * 4
    budget_rows = max(sub, cfg["vmem_budget"] // per_row)

    if batch_tile is not None:
        tb = int(batch_tile)
        assert tb == B or (tb % sub == 0 and 0 < tb <= B), (tb, B, sub)
    elif B <= sub or (num_splits == 1 and B <= budget_rows):
        tb = B  # single full-dim block, no padding/divisibility constraints
    else:
        target = _round_up(pl.cdiv(B, num_splits), sub)
        tb = min(budget_rows, target, B)
        tb = max(sub, (tb // sub) * sub)  # multiple of `sub`, within array bounds

    total_blocks = pl.cdiv(B, tb)          # number of blocks actually containing data
    num_splits = min(num_splits, total_blocks)
    tiles = pl.cdiv(total_blocks, num_splits)
    last_block = total_blocks - 1

    # Index map over consecutive batch blocks; if the nominal block count exceeds the
    # real one (odd split), clamp the DMA to the last valid block — the kernel masks
    # the duplicate by its nominal row index, so nothing is double-counted.
    if num_splits * tiles == total_blocks:
        idx_map = lambda c, t: (c * tiles + t, 0)
    else:
        idx_map = lambda c, t: (jnp.minimum(c * tiles + t, last_block), 0)
    in_block = pl.BlockSpec((tb, D), idx_map)

    vmem_need = tb * per_row + tb * 4 + (1 << 20)
    vmem_limit = int(min(max(vmem_need, 16 << 20), cfg["vmem_cap"]))

    partial = pl.pallas_call(
        _make_triplet_loss_kernel(float(margin), B, tiles, tb),
        out_shape=jax.ShapeDtypeStruct((num_splits, 1, 1), jnp.float32),
        grid=(num_splits, tiles),
        in_specs=[in_block, in_block, in_block],
        out_specs=pl.BlockSpec((1, 1, 1), lambda c, t: (c, 0, 0)),
        scratch_shapes=[pltpu.VMEM((tb, 1), jnp.float32)],
        compiler_params=pltpu.CompilerParams(
            dimension_semantics=("parallel", "arbitrary"),
            vmem_limit_bytes=vmem_limit,
        ),
    )(ref, pos, neg)

    # Sum the per-split partials and normalize by the true batch size ('mean').
    return jnp.sum(partial) / B


def _reference_loss(ref, pos, neg, margin):
    # Matches torch.nn.functional.cosine_similarity eps semantics (per-norm clamp).
    def cos(a, b):
        na = jnp.maximum(jnp.linalg.norm(a, axis=1), _EPS)
        nb = jnp.maximum(jnp.linalg.norm(b, axis=1), _EPS)
        return jnp.sum(a * b, axis=1) / (na * nb)

    x1 = cos(ref, pos)
    x2 = cos(ref, neg)
    return jnp.mean(jnp.maximum(0.0, margin - (x1 - x2)))


if __name__ == "__main__":
    key = jax.random.PRNGKey(0)
    margin = 0.2  # cfg.SOLVER.MARGIN (deterministic, set in-script)

    def run_case(B, D, dtype=jnp.float32, batch_tile=None, num_splits=None, seed=0):
        k1, k2, k3 = jax.random.split(jax.random.fold_in(key, seed), 3)
        ref = jax.random.normal(k1, (B, D), dtype=jnp.float32).astype(dtype)
        pos = jax.random.normal(k2, (B, D), dtype=jnp.float32).astype(dtype)
        neg = jax.random.normal(k3, (B, D), dtype=jnp.float32).astype(dtype)

        got = jax.block_until_ready(
            triplet_ranking_loss(ref, pos, neg, margin=margin,
                                 batch_tile=batch_tile, num_splits=num_splits))
        want = jax.block_until_ready(
            _reference_loss(ref.astype(jnp.float32), pos.astype(jnp.float32),
                            neg.astype(jnp.float32), margin))
        assert jnp.allclose(got, want, atol=1e-5, rtol=1e-5), (B, D, got, want)

    # Small embedding batch consistent with the module's forward.
    run_case(8, 32, seed=0)
    # Odd batch size, single full-dim block (default auto-tiling path).
    run_case(300, 32, seed=1)
    # Forced multi-tile + 2-way split: exercises accumulate/finalize, the tail mask
    # and the clamped duplicate block, even on single-TensorCore chips.
    run_case(300, 32, batch_tile=128, num_splits=2, seed=2)
    # Feature dim that is not a multiple of 128 (full-D block, lane padding in VMEM).
    run_case(256, 96, seed=3)
    # bf16 inputs (halved HBM traffic), f32 math in-kernel.
    run_case(64, 32, dtype=jnp.bfloat16, seed=4)

    print("KERNEL_OK")
</pallas_src>

<mosaic_0001>
module attributes {stable_mosaic.version = 11 : i64} {
  func.func @kernel(%arg0: i32, %arg1: i32, %arg2: memref<8x32xf32, #tpu.memory_space<vmem>>, %arg3: memref<8x32xf32, #tpu.memory_space<vmem>>, %arg4: memref<8x32xf32, #tpu.memory_space<vmem>>, %arg5: memref<1x1x1xf32, #tpu.memory_space<vmem>>, %arg6: memref<8x1xf32, #tpu.memory_space<vmem>>) attributes {dimension_semantics = [#tpu.dimension_semantics<parallel>, #tpu.dimension_semantics<arbitrary>], iteration_bounds = array<i64: 1, 1>, scalar_prefetch = 0 : i64, scratch_operands = 1 : i64, tpu.core_type = #tpu.core_type<tc>, window_params = [{transform_indices = @transform_0, window_bounds = array<i64: 8, 32>}, {transform_indices = @transform_1, window_bounds = array<i64: 8, 32>}, {transform_indices = @transform_2, window_bounds = array<i64: 8, 32>}, {transform_indices = @transform_3, window_bounds = array<i64: 1, 1, 1>}]} {
    %c0_i32 = arith.constant 0 : i32
    %0 = arith.cmpi eq, %arg1, %c0_i32 : i32
    %1 = arith.extui %0 : i1 to i32
    %c0_i32_0 = arith.constant 0 : i32
    %2 = arith.cmpi ne, %1, %c0_i32_0 : i32
    scf.if %2 {
      %cst_23 = arith.constant 0.000000e+00 : f32
      %53 = vector.broadcast %cst_23 : f32 to vector<8x1xf32>
      %c0_24 = arith.constant 0 : index
      %c0_25 = arith.constant 0 : index
      %54 = vector.load %arg6[%c0_24, %c0_25] : memref<8x1xf32, #tpu.memory_space<vmem>>, vector<8x1xf32>
      tpu.vector_store %arg6[%c0_24, %c0_25], %53 {strides = array<i32>} : memref<8x1xf32, #tpu.memory_space<vmem>>, vector<8x1xf32>,
    } else {
    }
    %c0 = arith.constant 0 : index
    %c0_1 = arith.constant 0 : index
    %3 = vector.load %arg2[%c0, %c0_1] : memref<8x32xf32, #tpu.memory_space<vmem>>, vector<8x32xf32>
    %c0_2 = arith.constant 0 : index
    %c0_3 = arith.constant 0 : index
    %4 = vector.load %arg3[%c0_2, %c0_3] : memref<8x32xf32, #tpu.memory_space<vmem>>, vector<8x32xf32>
    %c0_4 = arith.constant 0 : index
    %c0_5 = arith.constant 0 : index
    %5 = vector.load %arg4[%c0_4, %c0_5] : memref<8x32xf32, #tpu.memory_space<vmem>>, vector<8x32xf32>
    %6 = arith.mulf %3, %4 : vector<8x32xf32>
    %cst = arith.constant dense<0.000000e+00> : vector<8xf32>
    %7 = vector.multi_reduction <add>, %6, %cst [1] : vector<8x32xf32> to vector<8xf32>
    %8 = vector.shape_cast %7 : vector<8xf32> to vector<8x1xf32>
    %9 = arith.mulf %3, %5 : vector<8x32xf32>
    %cst_6 = arith.constant dense<0.000000e+00> : vector<8xf32>
    %10 = vector.multi_reduction <add>, %9, %cst_6 [1] : vector<8x32xf32> to vector<8xf32>
    %11 = vector.shape_cast %10 : vector<8xf32> to vector<8x1xf32>
    %12 = arith.mulf %3, %3 : vector<8x32xf32>
    %cst_7 = arith.constant dense<0.000000e+00> : vector<8xf32>
    %13 = vector.multi_reduction <add>, %12, %cst_7 [1] : vector<8x32xf32> to vector<8xf32>
    %14 = vector.shape_cast %13 : vector<8xf32> to vector<8x1xf32>
    %15 = arith.mulf %4, %4 : vector<8x32xf32>
    %cst_8 = arith.constant dense<0.000000e+00> : vector<8xf32>
    %16 = vector.multi_reduction <add>, %15, %cst_8 [1] : vector<8x32xf32> to vector<8xf32>
    %17 = vector.shape_cast %16 : vector<8xf32> to vector<8x1xf32>
    %18 = arith.mulf %5, %5 : vector<8x32xf32>
    %cst_9 = arith.constant dense<0.000000e+00> : vector<8xf32>
    %19 = vector.multi_reduction <add>, %18, %cst_9 [1] : vector<8x32xf32> to vector<8xf32>
    %20 = vector.shape_cast %19 : vector<8xf32> to vector<8x1xf32>
    %cst_10 = arith.constant 1.000000e-16 : f32
    %21 = vector.broadcast %cst_10 : f32 to vector<8x1xf32>
    %22 = arith.maximumf %14, %21 : vector<8x1xf32>
    %23 = math.rsqrt %22 : vector<8x1xf32>
    %cst_11 = arith.constant 1.000000e-16 : f32
    %24 = vector.broadcast %cst_11 : f32 to vector<8x1xf32>
    %25 = arith.maximumf %17, %24 : vector<8x1xf32>
    %26 = math.rsqrt %25 : vector<8x1xf32>
    %cst_12 = arith.constant 1.000000e-16 : f32
    %27 = vector.broadcast %cst_12 : f32 to vector<8x1xf32>
    %28 = arith.maximumf %20, %27 : vector<8x1xf32>
    %29 = math.rsqrt %28 : vector<8x1xf32>
    %30 = arith.mulf %8, %23 : vector<8x1xf32>
    %31 = arith.mulf %30, %26 : vector<8x1xf32>
    %32 = arith.mulf %11, %23 : vector<8x1xf32>
    %33 = arith.mulf %32, %29 : vector<8x1xf32>
    %34 = arith.subf %31, %33 : vector<8x1xf32>
    %cst_13 = arith.constant 2.000000e-01 : f32
    %35 = vector.broadcast %cst_13 : f32 to vector<8x1xf32>
    %36 = arith.subf %35, %34 : vector<8x1xf32>
    %cst_14 = arith.constant 0.000000e+00 : f32
    %37 = vector.broadcast %cst_14 : f32 to vector<8x1xf32>
    %38 = arith.maximumf %37, %36 : vector<8x1xf32>
    %c1_i32 = arith.constant 1 : i32
    %39 = arith.muli %arg0, %c1_i32 : i32
    %40 = arith.addi %39, %arg1 : i32
    %c8_i32 = arith.constant 8 : i32
    %41 = arith.muli %40, %c8_i32 : i32
    %c8_i32_15 = arith.constant 8 : i32
    %42 = arith.addi %41, %c8_i32_15 : i32
    %c8_i32_16 = arith.constant 8 : i32
    %43 = arith.cmpi sle, %42, %c8_i32_16 : i32
    %44 = arith.extui %43 : i1 to i32
    %c0_i32_17 = arith.constant 0 : i32
    %45 = arith.cmpi ne, %44, %c0_i32_17 : i32
    scf.if %45 {
      %c0_23 = arith.constant 0 : index
      %c0_24 = arith.constant 0 : index
      %53 = vector.load %arg6[%c0_23, %c0_24] : memref<8x1xf32, #tpu.memory_space<vmem>>, vector<8x1xf32>
      %54 = arith.addf %53, %38 : vector<8x1xf32>
      %c0_25 = arith.constant 0 : index
      %c0_26 = arith.constant 0 : index
      %55 = vector.load %arg6[%c0_25, %c0_26] : memref<8x1xf32, #tpu.memory_space<vmem>>, vector<8x1xf32>
      tpu.vector_store %arg6[%c0_25, %c0_26], %54 {strides = array<i32>} : memref<8x1xf32, #tpu.memory_space<vmem>>, vector<8x1xf32>,
    } else {
    }
    %c8_i32_18 = arith.constant 8 : i32
    %46 = arith.addi %41, %c8_i32_18 : i32
    %c8_i32_19 = arith.constant 8 : i32
    %47 = arith.cmpi sgt, %46, %c8_i32_19 : i32
    %48 = arith.extui %47 : i1 to i32
    %c0_i32_20 = arith.constant 0 : i32
    %49 = arith.cmpi ne, %48, %c0_i32_20 : i32
    scf.if %49 {
      %53 = tpu.iota {dimensions = array<i32: 0>} : vector<8x1xi32>
      %54 = vector.broadcast %41 : i32 to vector<8x1xi32>
      %55 = arith.addi %54, %53 : vector<8x1xi32>
      %c0_23 = arith.constant 0 : index
      %c0_24 = arith.constant 0 : index
      %56 = vector.load %arg6[%c0_23, %c0_24] : memref<8x1xf32, #tpu.memory_space<vmem>>, vector<8x1xf32>
      %c8_i32_25 = arith.constant 8 : i32
      %57 = vector.broadcast %c8_i32_25 : i32 to vector<8x1xi32>
      %58 = arith.cmpi slt, %55, %57 : vector<8x1xi32>
      %cst_26 = arith.constant 0.000000e+00 : f32
      %59 = vector.broadcast %cst_26 : f32 to vector<8x1xf32>
      %60 = arith.select %58, %38, %59 : vector<8x1xi1>, vector<8x1xf32>
      %61 = arith.addf %56, %60 : vector<8x1xf32>
      %c0_27 = arith.constant 0 : index
      %c0_28 = arith.constant 0 : index
      %62 = vector.load %arg6[%c0_27, %c0_28] : memref<8x1xf32, #tpu.memory_space<vmem>>, vector<8x1xf32>
      tpu.vector_store %arg6[%c0_27, %c0_28], %61 {strides = array<i32>} : memref<8x1xf32, #tpu.memory_space<vmem>>, vector<8x1xf32>,
    } else {
    }
    %c0_i32_21 = arith.constant 0 : i32
    %50 = arith.cmpi eq, %arg1, %c0_i32_21 : i32
    %51 = arith.extui %50 : i1 to i32
    %c0_i32_22 = arith.constant 0 : i32
    %52 = arith.cmpi ne, %51, %c0_i32_22 : i32
    scf.if %52 {
      %c0_23 = arith.constant 0 : index
      %c0_24 = arith.constant 0 : index
      %53 = vector.load %arg6[%c0_23, %c0_24] : memref<8x1xf32, #tpu.memory_space<vmem>>, vector<8x1xf32>
      %cst_25 = arith.constant dense<0.000000e+00> : vector<1xf32>
      %54 = vector.multi_reduction <add>, %53, %cst_25 [0] : vector<8x1xf32> to vector<1xf32>
      %55 = vector.shape_cast %54 : vector<1xf32> to vector<1x1xf32>
      %56 = vector.shape_cast %55 : vector<1x1xf32> to vector<1x1x1xf32>
      %c0_26 = arith.constant 0 : index
      %c0_27 = arith.constant 0 : index
      %c0_28 = arith.constant 0 : index
      %57 = vector.load %arg5[%c0_26, %c0_27, %c0_28] : memref<1x1x1xf32, #tpu.memory_space<vmem>>, vector<1x1x1xf32>
      tpu.vector_store %arg5[%c0_26, %c0_27, %c0_28], %56 {strides = array<i32>} : memref<1x1x1xf32, #tpu.memory_space<vmem>>, vector<1x1x1xf32>,
    } else {
    }
    return
  }
  func.func @transform_0(%arg0: i32, %arg1: i32) -> (i32, i32) {
    %c1_i32 = arith.constant 1 : i32
    %0 = arith.muli %arg0, %c1_i32 : i32
    %1 = arith.addi %0, %arg1 : i32
    %c0_i32 = arith.constant 0 : i32
    %c0_i32_0 = arith.constant 0 : i32
    return %1, %c0_i32 : i32, i32
  }
  func.func @transform_1(%arg0: i32, %arg1: i32) -> (i32, i32) {
    %c1_i32 = arith.constant 1 : i32
    %0 = arith.muli %arg0, %c1_i32 : i32
    %1 = arith.addi %0, %arg1 : i32
    %c0_i32 = arith.constant 0 : i32
    %c0_i32_0 = arith.constant 0 : i32
    return %1, %c0_i32 : i32, i32
  }
  func.func @transform_2(%arg0: i32, %arg1: i32) -> (i32, i32) {
    %c1_i32 = arith.constant 1 : i32
    %0 = arith.muli %arg0, %c1_i32 : i32
    %1 = arith.addi %0, %arg1 : i32
    %c0_i32 = arith.constant 0 : i32
    %c0_i32_0 = arith.constant 0 : i32
    return %1, %c0_i32 : i32, i32
  }
  func.func @transform_3(%arg0: i32, %arg1: i32) -> (i32, i32, i32) {
    %c0_i32 = arith.constant 0 : i32
    %c0_i32_0 = arith.constant 0 : i32
    %c0_i32_1 = arith.constant 0 : i32
    return %arg0, %c0_i32, %c0_i32_0 : i32, i32, i32
  }
}

</mosaic_0001>

<bundles_post_ra>
// kernel: tpu_custom_call.1
= control target key start
LH: loop header
LB: loop body
LE: loop exit
PB: predicated region body
PF: predicated region fallthrough
CT: control target
= control target key end

     0   :  { %8 = vsyncpa [#allocation4], 0  ;;  %s346_s0 = inlined_call_operand.hbm [shape: f32[8,32], index: 0, kind: input, shape index: {}]   ;;  %s347_s1 = inlined_call_operand.hbm [shape: f32[8,32], index: 1, kind: input, shape index: {}]   ;;  %s348_s2 = inlined_call_operand.hbm [shape: f32[8,32], index: 2, kind: input, shape index: {}]   ;;  %s349_s3 = inlined_call_operand.hbm [shape: f32[1,1,1], index: 3, kind: output, shape index: {}]  }
   0x1   :  { %9 = vsyncpa [#allocation7], 0 }
   0x2   :  { %10 = vsyncpa [#allocation5], 0  ;;  %s265_s12 = smov [#allocation6]   ;;  %s266_s14 = smov [#allocation3]  }
   0x3   :  { %s33_s13 = sshll.u32 %s265_s12, 4  ;;  %s20_s15 = sshll.u32 %s266_s14, 4  ;;  %s34_s13 = int_to_ptr.vmem [resolvable:$true] %s33_s13  ;;  %s21_s15 = int_to_ptr.vmem [resolvable:$true] %s20_s15 }
   0x4   :  { %s171_s18 = scalar_lea.hbm %s347_s1, 128 }
   0x5   :  { %p172_p0 = scmp.ne.s32.totalorder %s347_s1, %s171_s18  ;;  %p175_p1 = scmp.lt.u32.totalorder %s171_s18, %s347_s1 }
   0x7   :  { %p177_p2 = pnand %p175_p1, %p172_p0 }
   0x9   :  { %180 = shalt.err (!%p177_p2)
}
   0xa   :  { %s181_s23 = scalar_lea.vmem %s34_s13, 128  ;;  %p186_p4 = scmp.lt.s32.totalorder %s34_s13, %s34_s13 }
   0xb   :  { %p182_p3 = scmp.ne.s32.totalorder %s34_s13, %s181_s23  ;;  %p187_p5 = scmp.lt.s32.totalorder %s181_s23, %s181_s23 }
   0xd   :  { %p188_p6 = por %p187_p5, %p186_p4 }
   0xf   :  { %p189_p7 = pnand %p188_p6, %p182_p3 }
  0x11   :  { %192 = shalt.err (!%p189_p7)
}
  0x12   :  { %36 = dma.hbm_to_vmem [thread:$0]  %s347_s1, 128, %s34_s13, [#allocation7]  }
  0x13   :  { %s193_s28 = scalar_lea.hbm %s346_s0, 128 }
  0x14   :  { %p194_p8 = scmp.ne.s32.totalorder %s346_s0, %s193_s28  ;;  %p197_p9 = scmp.lt.u32.totalorder %s193_s28, %s346_s0 }
  0x16   :  { %p199_p10 = pnand %p197_p9, %p194_p8 }
  0x18   :  { %202 = shalt.err (!%p199_p10)
}
  0x19   :  { %s203_s6 = scalar_lea.vmem %s21_s15, 128  ;;  %p208_p12 = scmp.lt.s32.totalorder %s21_s15, %s21_s15 }
  0x1a   :  { %p204_p11 = scmp.ne.s32.totalorder %s21_s15, %s203_s6  ;;  %p209_p13 = scmp.lt.s32.totalorder %s203_s6, %s203_s6 }
  0x1c   :  { %p210_p0 = por %p209_p13, %p208_p12 }
  0x1e   :  { %p211_p1 = pnand %p210_p0, %p204_p11 }
  0x20   :  { %214 = shalt.err (!%p211_p1)
}
  0x21   :  { %23 = dma.hbm_to_vmem [thread:$0]  %s346_s0, 128, %s21_s15, [#allocation4]  }
  0x22   :  { %s267_s8 = smov [#allocation8]   ;;  %s215_s12 = scalar_lea.hbm %s348_s2, 128 }
  0x23   :  { %s46_s9 = sshll.u32 %s267_s8, 4  ;;  %p216_p2 = scmp.ne.s32.totalorder %s348_s2, %s215_s12  ;;  %s47_s9 = int_to_ptr.vmem [resolvable:$true] %s46_s9 }
  0x24   :  { %p219_p3 = scmp.lt.u32.totalorder %s215_s12, %s348_s2 }
  0x26   :  { %p221_p4 = pnand %p219_p3, %p216_p2 }
  0x28   :  { %224 = shalt.err (!%p221_p4)
}
  0x29   :  { %s225_s18 = scalar_lea.vmem %s47_s9, 128  ;;  %p230_p6 = scmp.lt.s32.totalorder %s47_s9, %s47_s9 }
  0x2a   :  { %p226_p5 = scmp.ne.s32.totalorder %s47_s9, %s225_s18  ;;  %p231_p7 = scmp.lt.s32.totalorder %s225_s18, %s225_s18 }
  0x2c   :  { %p232_p8 = por %p231_p7, %p230_p6 }
  0x2e   :  { %p233_p9 = pnand %p232_p8, %p226_p5 }
  0x30   :  { %236 = shalt.err (!%p233_p9)
}
  0x31   :  { %49 = dma.hbm_to_vmem [thread:$0]  %s348_s2, 128, %s47_s9, [#allocation7]  }
  0x32   :  { %259 = dma.done.wait [#allocation4], 128  }
  0x33   :  { %260 = vsyncadd [#allocation4], 4294967168 }
  0x34   :  { %261 = dma.done.wait [#allocation7], 256  }
  0x35   :  { %262 = vsyncadd [#allocation7], 4294967040  ;;  %v68_v0 = vld [vmem:[#allocation3] sm:$0xff]  ;;  %vm72_vm0 = vcmask 261120   ;;  %v70_v1 = vld [vmem:[#allocation8] sm:$0xff]  ;;  %vm66_vm1 = vcmask 7168  }
  0x36   :  { %v69_v2 = vld [vmem:[#allocation6] sm:$0xff]  ;;  %v80_v3 = vmul.f32 %v68_v0, %v68_v0  ;;  %v88_v4 = vmul.f32 %v70_v1, %v70_v1  ;;  %v76_v10 = vmul.f32 %v70_v1, %v68_v0  ;;  %v268_v13 = vmov 0.0   ;;  %s269_s2 = smov [#allocation9]  }
  0x37   :  { %v84_v5 = vmul.f32 %v69_v2, %v69_v2  ;;  %v71_v6 = vmul.f32 %v69_v2, %v68_v0  ;;  %67 = vst.msk [vmem:[#allocation2] sm:$0xff] %vm66_vm1, %v268_v13  ;;  %s150_s19 = sshll.u32 %s269_s2, 4  ;;  %vm142_vm2 = vcmask 0   ;;  %s151_s19 = int_to_ptr.vmem [resolvable:$true] %s150_s19 }
  0x38   :  { %v81_v7 = vsel %vm72_vm0, %v80_v3, 0.0  ;;  %v89_v8 = vsel %vm72_vm0, %v88_v4, 0.0  ;;  %v77_v12 = vsel %vm72_vm0, %v76_v10, 0.0  ;;  %s237_s20 = scalar_lea.vmem %s151_s19, 16  ;;  %s241_s21 = scalar_lea.vmem %s151_s19, 32 }
  0x39   :  { %82 = vadd.xlane.f32.xlu0 %v81_v7  ;;  %90 = vadd.xlane.f32.xlu1 %v89_v8  ;;  %v85_v9 = vsel %vm72_vm0, %v84_v5, 0.0  ;;  %v73_v11 = vsel %vm72_vm0, %v71_v6, 0.0  ;;  %p238_p10 = scmp.ne.s32.totalorder %s151_s19, %s237_s20  ;;  %p242_p11 = scmp.lt.s32.totalorder %s151_s19, %s151_s19 }
  0x3a   :  { %p243_p12 = scmp.lt.s32.totalorder %s241_s21, %s237_s20 }
  0x3c   :  { %p244_p13 = por %p243_p12, %p242_p11 }
  0x3d   :  { %86 = vadd.xlane.f32.xlu0 %v85_v9  ;;  %74 = vadd.xlane.f32.xlu1 %v73_v11 }
  0x3e   :  { %v112_v31 = vld [vmem:[#allocation2] sm:$0xff]  ;;  %p245_p0 = pnand %p244_p13, %p238_p10 }
  0x41   :  { %78 = vadd.xlane.f32.xlu0 %v77_v12 }
  0xc6   :  { %v83_v14 = vpop.xlane.xlu0 %82  ;;  %v91_v15 = vpop.xlane.xlu1 %90 }
  0xc7   :  { %v92_v16 = vmax.f32 %v83_v14, 1e-16  ;;  %v96_v17 = vmax.f32 %v91_v15, 1e-16 }
  0xc9   :  { %165 = vrsqrt.f32 %v92_v16 }
  0xca   :  { %v87_v18 = vpop.xlane.xlu0 %86  ;;  %167 = vrsqrt.f32 %v96_v17  ;;  %v75_v22 = vpop.xlane.xlu1 %74 }
  0xcb   :  { %v94_v19 = vmax.f32 %v87_v18, 1e-16 }
  0xcd   :  { %169 = vrsqrt.f32 %v94_v19 }
  0xce   :  { %v79_v20 = vpop.xlane.xlu0 %78 }
  0xd3   :  { %v166_v21 = vpop.eup %165 }
  0xd4   :  { %v100_v23 = vmul.f32 %v166_v21, %v79_v20  ;;  %v168_v24 = vpop.eup %167  ;;  %v98_v25 = vmul.f32 %v166_v21, %v75_v22 }
  0xd6   :  { %v101_v27 = vmul.f32 %v168_v24, %v100_v23 }
  0xd7   :  { %v170_v26 = vpop.eup %169 }
  0xd8   :  { %v99_v28 = vmul.f32 %v170_v26, %v98_v25 }
  0xda   :  { %v102_v29 = vsub.f32 %v99_v28, %v101_v27 }
  0xdc   :  { %v103_v30 = vsub.f32 0.2, %v102_v29 }
  0xde   :  { %v104_v32 = vmax.f32 %v103_v30, 0.0 }
  0xe0   :  { %v113_v33 = vadd.f32 %v112_v31, %v104_v32 }
  0xe2   :  { %115 = vst.msk [vmem:[#allocation2] sm:$0xff] %vm66_vm1, %v113_v33 }
  0xe9   :  { %v133_v34 = vld [vmem:[#allocation2] sm:$0xff] }
  0xea   :  { %v135_v35 = vsel %vm66_vm1, %v133_v34, 0.0 }
  0xeb   :  { %v136_v36 = vrot.slane %v135_v35, 4 }
  0xed   :  { %v137_v37 = vadd.f32 %v136_v36, %v135_v35 }
  0xef   :  { %v138_v38 = vrot.slane %v137_v37, 2 }
  0xf1   :  { %v139_v39 = vadd.f32 %v138_v38, %v137_v37 }
  0xf3   :  { %v140_v40 = vrot.slane %v139_v39, 1 }
  0xf5   :  { %v141_v41 = vadd.f32 %v140_v40, %v139_v39 }
  0xf7   :  { %143 = vst.msk [vmem:[#allocation9] sm:$0x1] %vm142_vm2, %v141_v41 }
  0xf8   :  { %248 = shalt.err (!%p245_p0)
}
  0xf9   :  { %s249_s24 = scalar_lea.hbm %s349_s3, 16 }
  0xfa   :  { %p250_p1 = scmp.ne.s32.totalorder %s349_s3, %s249_s24  ;;  %p253_p2 = scmp.lt.u32.totalorder %s249_s24, %s349_s3 }
  0xfc   :  { %p255_p3 = pnand %p253_p2, %p250_p1 }
  0xfe   :  { %258 = shalt.err (!%p255_p3)
}
  0xff   :  { %153 = dma.vmem_to_hbm [thread:$0]  %s151_s19, 16, %s349_s3, [#allocation5]  }
 0x100   :  { %263 = dma.done.wait [#allocation5], 16  }
 0x101   :  { %264 = vsyncadd [#allocation5], 4294967280 }
 0x102   :  { %157 = vsyncpa [#allocation4], 1 }
 0x103   :  { %158 = vsyncpa [#allocation7], 1 }
 0x104   :  { %159 = vsyncpa [#allocation5], 1 }

</bundles_post_ra>
